<compile_context>
chip_gen: v7x
topology: tpu7x:2x2x1
jax: 0.10.0
libtpu: 0.0.40
codegen_flags: <defaults>
</compile_context>

<pallas_src>
import jax
import jax.numpy as jnp
from jax.experimental import pallas as pl
from jax.experimental.pallas import tpu as pltpu


def _round_up(n, m):
    return ((n + m - 1) // m) * m


def mlp_kernel(x_ref, w1_ref, b1_ref, w23_ref, b23_ref, o_ref):
    # Layer 1: bf16 MXU matmul with f32 accumulation; bias + ReLU on the VPU.
    x = x_ref[...].astype(jnp.bfloat16)                       # (TB, num_input)
    y1 = jnp.dot(x, w1_ref[...], preferred_element_type=jnp.float32) + b1_ref[...]
    y1 = jnp.maximum(y1, 0.0).astype(jnp.bfloat16)            # (TB, Hp)

    # Fused l2+l3: contract the hidden dim of the (8, Hp) fused weight rows
    # (row 0 = W3@W2 padded, rows 1..7 zero) against y1 (TB, Hp) on the MXU.
    # Result (8, TB); row 0 is the prediction row, lane-dense along the batch.
    out8 = jax.lax.dot_general(
        w23_ref[...], y1,
        dimension_numbers=(((1,), (1,)), ((), ())),
        preferred_element_type=jnp.float32)
    o_ref[...] = out8[0:1, :] + b23_ref[0, 0]                 # (1, TB) + SMEM scalar


def prepare_params(params, *, hidden_pad=128):
    """One-time parameter preparation (do NOT call per forward):
    transpose W1, fold l2/l3, pad hidden dim to a lane multiple, cast to bf16."""
    w1, b1, w2, b2, w3, b3 = params
    H = w1.shape[0]
    Hp = _round_up(H, hidden_pad)

    w1_p = jnp.pad(w1.T, ((0, 0), (0, Hp - H))).astype(jnp.bfloat16)     # (in, Hp)
    b1_p = jnp.pad(b1, (0, Hp - H)).reshape(1, Hp).astype(jnp.float32)   # (1, Hp)

    w23 = w3 @ w2                                                        # (1, H)
    w23_p = jnp.pad(w23, ((0, 7), (0, Hp - H))).astype(jnp.bfloat16)     # (8, Hp)
    b23 = (w3 @ b2 + b3).reshape(1, 1).astype(jnp.float32)               # scalar

    return (w1_p, b1_p, w23_p, b23)


def basic_neural_net_forward(x, prepared, *, block_b=512):
    """Fused 3-layer MLP forward, single batch-tiled Pallas call."""
    w1_p, b1_p, w23_p, b23 = prepared
    B, num_input = x.shape
    Hp = w1_p.shape[1]

    TB = _round_up(min(block_b, B), 128)         # lane-dense output tile width
    grid = (pl.cdiv(B, TB),)

    out_t = pl.pallas_call(
        mlp_kernel,
        out_shape=jax.ShapeDtypeStruct((1, B), jnp.float32),
        grid=grid,
        in_specs=[
            pl.BlockSpec((TB, num_input), lambda i: (i, 0)),      # x: tiled + pipelined
            pl.BlockSpec((num_input, Hp), lambda i: (0, 0)),      # W1 (bf16): VMEM-resident
            pl.BlockSpec((1, Hp), lambda i: (0, 0)),              # b1: VMEM-resident
            pl.BlockSpec((8, Hp), lambda i: (0, 0)),              # fused W3@W2 (bf16): resident
            pl.BlockSpec(memory_space=pltpu.MemorySpace.SMEM),    # fused scalar bias
        ],
        out_specs=pl.BlockSpec((1, TB), lambda i: (0, i)),        # transposed, lane-dense
        compiler_params=pltpu.CompilerParams(
            dimension_semantics=("parallel",),                    # shard batch across v7x TCs
        ),
    )(x, w1_p, b1_p, w23_p, b23)

    # (1, B) and (B, 1) share the same row-major data order -> free reshape.
    return out_t.reshape(B, 1)


def init_params(key, num_input, num_hidden):
    """Mimic the module's __init__: kaiming_normal(fan_in, a=0) for matrices,
    zeros for 1-D params (biases)."""
    k1, k2, k3 = jax.random.split(key, 3)

    def kaiming(k, shape):
        fan_in = shape[1]
        std = (2.0 / fan_in) ** 0.5
        return std * jax.random.normal(k, shape, dtype=jnp.float32)

    w1 = kaiming(k1, (num_hidden, num_input))    # l1.weight
    b1 = jnp.zeros((num_hidden,), jnp.float32)   # l1.bias
    w2 = kaiming(k2, (num_hidden, num_hidden))   # l2.weight
    b2 = jnp.zeros((num_hidden,), jnp.float32)   # l2.bias
    w3 = kaiming(k3, (1, num_hidden))            # l3.weight
    b3 = jnp.zeros((1,), jnp.float32)            # l3.bias
    return (w1, b1, w2, b2, w3, b3)


def reference_forward(x, params):
    """Exact f32 equivalent of the PyTorch module's forward()."""
    w1, b1, w2, b2, w3, b3 = params
    y1 = jnp.maximum(x @ w1.T + b1, 0.0)
    y3 = y1 @ w2.T + b2
    return y3 @ w3.T + b3


def reference_forward_prepared(x, prepared):
    """Same math as the kernel (fused l2/l3, bf16 matmul inputs, f32 accumulate),
    computed with plain XLA ops — tight check isolating kernel correctness."""
    w1_p, b1_p, w23_p, b23 = prepared
    y1 = jnp.dot(x.astype(jnp.bfloat16), w1_p,
                 preferred_element_type=jnp.float32) + b1_p
    y1 = jnp.maximum(y1, 0.0).astype(jnp.bfloat16)
    out = jax.lax.dot_general(w23_p, y1, (((1,), (1,)), ((), ())),
                              preferred_element_type=jnp.float32)   # (8, B)
    return (out[0:1, :] + b23[0, 0]).reshape(-1, 1)


if __name__ == "__main__":
    key = jax.random.PRNGKey(0)
    kx, kp = jax.random.split(key)

    batch, num_input, num_hidden = 1024, 32, 32
    x = jax.random.normal(kx, (batch, num_input), dtype=jnp.float32)
    params = init_params(kp, num_input, num_hidden)

    prepared = prepare_params(params)     # one-time: transpose + fuse + pad + bf16 cast

    fwd = jax.jit(basic_neural_net_forward)
    y = jax.block_until_ready(fwd(x, prepared))
    assert y.shape == (batch, 1)

    # Tight check vs a reference using the identical bf16 weights/activations
    # (verifies the kernel math independent of bf16 quantization).
    y_bf = reference_forward_prepared(x, prepared)
    assert jnp.allclose(y, y_bf, atol=5e-3, rtol=5e-3), float(jnp.max(jnp.abs(y - y_bf)))

    # Loose check vs the exact f32 PyTorch-equivalent forward (bf16 MXU inputs).
    y_ref = reference_forward(x, params)
    assert jnp.allclose(y, y_ref, atol=1e-1, rtol=1e-1), float(jnp.max(jnp.abs(y - y_ref)))

    print("KERNEL_OK")
</pallas_src>

<mosaic_0001>
module attributes {stable_mosaic.version = 11 : i64} {
  func.func @mlp_kernel(%arg0: i32, %arg1: memref<512x32xf32, #tpu.memory_space<vmem>>, %arg2: memref<32x128xbf16, #tpu.memory_space<vmem>>, %arg3: memref<1x128xf32, #tpu.memory_space<vmem>>, %arg4: memref<8x128xbf16, #tpu.memory_space<vmem>>, %arg5: memref<1x1xf32, #tpu.memory_space<smem>>, %arg6: memref<1x512xf32, #tpu.memory_space<vmem>>) attributes {dimension_semantics = [#tpu.dimension_semantics<parallel>], iteration_bounds = array<i64: 2>, scalar_prefetch = 0 : i64, scratch_operands = 0 : i64, tpu.core_type = #tpu.core_type<tc>, window_params = [{transform_indices = @transform_0, window_bounds = array<i64: 512, 32>}, {pipeline_mode = #tpu.pipeline_mode<synchronous>, transform_indices = @transform_1, window_bounds = array<i64: 32, 128>}, {pipeline_mode = #tpu.pipeline_mode<synchronous>, transform_indices = @transform_2, window_bounds = array<i64: 1, 128>}, {pipeline_mode = #tpu.pipeline_mode<synchronous>, transform_indices = @transform_3, window_bounds = array<i64: 8, 128>}, {transform_indices = @transform_4, window_bounds = array<i64: 1, 1>}, {transform_indices = @transform_5, window_bounds = array<i64: 1, 512>}]} {
    %c0 = arith.constant 0 : index
    %c0_0 = arith.constant 0 : index
    %0 = vector.load %arg1[%c0, %c0_0] : memref<512x32xf32, #tpu.memory_space<vmem>>, vector<512x32xf32>
    %1 = arith.truncf %0 : vector<512x32xf32> to vector<512x32xbf16>
    %c0_1 = arith.constant 0 : index
    %c0_2 = arith.constant 0 : index
    %2 = vector.load %arg2[%c0_1, %c0_2] : memref<32x128xbf16, #tpu.memory_space<vmem>>, vector<32x128xbf16>
    %cst = arith.constant dense<0.000000e+00> : vector<512x128xf32>
    %3 = tpu.matmul %1, %2, %cst {dimension_numbers = #tpu.dot_dimension_numbers<[1], [0], [0], [1], [0, 0, 1, 1], [], []>} : vector<512x32xbf16>, vector<32x128xbf16>, vector<512x128xf32> -> vector<512x128xf32>
    %c0_3 = arith.constant 0 : index
    %c0_4 = arith.constant 0 : index
    %4 = vector.load %arg3[%c0_3, %c0_4] : memref<1x128xf32, #tpu.memory_space<vmem>>, vector<1x128xf32>
    %5 = vector.broadcast %4 : vector<1x128xf32> to vector<512x128xf32>
    %6 = arith.addf %3, %5 : vector<512x128xf32>
    %cst_5 = arith.constant 0.000000e+00 : f32
    %7 = vector.broadcast %cst_5 : f32 to vector<512x128xf32>
    %8 = arith.maximumf %6, %7 : vector<512x128xf32>
    %9 = arith.truncf %8 : vector<512x128xf32> to vector<512x128xbf16>
    %c0_6 = arith.constant 0 : index
    %c0_7 = arith.constant 0 : index
    %10 = vector.load %arg4[%c0_6, %c0_7] : memref<8x128xbf16, #tpu.memory_space<vmem>>, vector<8x128xbf16>
    %cst_8 = arith.constant dense<0.000000e+00> : vector<8x512xf32>
    %11 = tpu.matmul %10, %9, %cst_8 {dimension_numbers = #tpu.dot_dimension_numbers<[1], [1], [0], [0], [0, 0, 1, 0], [], []>} : vector<8x128xbf16>, vector<512x128xbf16>, vector<8x512xf32> -> vector<8x512xf32>
    %12 = vector.extract_strided_slice %11 {offsets = [0, 0], sizes = [1, 512], strides = [1, 1]} : vector<8x512xf32> to vector<1x512xf32>
    %c0_9 = arith.constant 0 : index
    %c0_10 = arith.constant 0 : index
    %13 = memref.load %arg5[%c0_9, %c0_10] : memref<1x1xf32, #tpu.memory_space<smem>>
    %14 = vector.broadcast %13 : f32 to vector<1x512xf32>
    %15 = arith.addf %12, %14 : vector<1x512xf32>
    %c0_11 = arith.constant 0 : index
    %c0_12 = arith.constant 0 : index
    %16 = vector.load %arg6[%c0_11, %c0_12] : memref<1x512xf32, #tpu.memory_space<vmem>>, vector<1x512xf32>
    tpu.vector_store %arg6[%c0_11, %c0_12], %15 {strides = array<i32>} : memref<1x512xf32, #tpu.memory_space<vmem>>, vector<1x512xf32>,
    return
  }
  func.func @transform_0(%arg0: i32) -> (i32, i32) {
    %c0_i32 = arith.constant 0 : i32
    %c0_i32_0 = arith.constant 0 : i32
    return %arg0, %c0_i32 : i32, i32
  }
  func.func @transform_1(%arg0: i32) -> (i32, i32) {
    %c0_i32 = arith.constant 0 : i32
    %c0_i32_0 = arith.constant 0 : i32
    %c0_i32_1 = arith.constant 0 : i32
    return %c0_i32, %c0_i32_0 : i32, i32
  }
  func.func @transform_2(%arg0: i32) -> (i32, i32) {
    %c0_i32 = arith.constant 0 : i32
    %c0_i32_0 = arith.constant 0 : i32
    %c0_i32_1 = arith.constant 0 : i32
    return %c0_i32, %c0_i32_0 : i32, i32
  }
  func.func @transform_3(%arg0: i32) -> (i32, i32) {
    %c0_i32 = arith.constant 0 : i32
    %c0_i32_0 = arith.constant 0 : i32
    %c0_i32_1 = arith.constant 0 : i32
    return %c0_i32, %c0_i32_0 : i32, i32
  }
  func.func @transform_4(%arg0: i32) -> (i32, i32) {
    %c0_i32 = arith.constant 0 : i32
    %c0_i32_0 = arith.constant 0 : i32
    %c0_i32_1 = arith.constant 0 : i32
    return %c0_i32, %c0_i32_0 : i32, i32
  }
  func.func @transform_5(%arg0: i32) -> (i32, i32) {
    %c0_i32 = arith.constant 0 : i32
    %c0_i32_0 = arith.constant 0 : i32
    return %c0_i32, %arg0 : i32, i32
  }
}

</mosaic_0001>

<bundles_post_ra>
// kernel: basic_neural_net_forward.1
= control target key start
LH: loop header
LB: loop body
LE: loop exit
PB: predicated region body
PF: predicated region fallthrough
CT: control target
= control target key end

     0   :  { %s1682_s0 = inlined_call_operand.vmem [shape: f32[1024,32], index: 0, kind: input, shape index: {}]   ;;  %s1683_s1 = inlined_call_operand.vmem [shape: bf16[32,128], index: 1, kind: input, shape index: {}]   ;;  %s1684_s2 = inlined_call_operand.vmem [shape: f32[1,128], index: 2, kind: input, shape index: {}]   ;;  %s1685_s3 = inlined_call_operand.vmem [shape: bf16[8,128], index: 3, kind: input, shape index: {}]   ;;  %s1686_s4 = inlined_call_operand.<no memory space> [shape: f32[1,1], index: 4, kind: input, shape index: {}]   ;;  %s1687_s5 = inlined_call_operand.hbm [shape: f32[1,1024], index: 5, kind: output, shape index: {}]  }
   0x1   :  { %10 = sst [smem:[#allocation2]] %s1686_s4 }
   0x2   :  { %11 = vsyncpa [#allocation4], 0 }
   0x3   :  { %13 = vsyncpa [#allocation4 + $0x1], 0  ;;  %s1353_s20 = smov 0   ;;  %s1355_s21 = smov 0  }
   0x4   :  { %s1357_s22 = smov 0   ;;  %s1359_s23 = smov 0  }
   0x5 LB: > { %s1025_s4 = sadd.s32 4294967295, %s1316_s23   ;;  %s1026_s24 = sadd.s32 4294967294, %s1316_s23   ;;  %s1316_s23 = sphi %s1359_s23, %s1693_s23   ;;  %s1312_s22 = sphi %s1357_s22, %s1692_s22   ;;  %s1308_s21 = sphi %s1355_s21, %s1691_s21   ;;  %s1304_s20 = sphi %s1353_s20, %s1690_s20  }
   0x6   : > { %s1376_s25 = sadd.s32 1, %s1316_s23   ;;  %s136_s26 = sadd.s32 1, %s1312_s22 }
   0x7   : > { %s133_s27 = ssub.s32 %s1316_s23, %s1376_s25  ;;  %p146_p0 = scmp.ne.s32.totalorder %s1312_s22, %s1308_s21 }
   0x8   : > { %p134_p1 = scmp.eq.s32.totalorder %s133_s27, 0  ;;  %p147_p2 = scmp.eq.s32.totalorder %s1025_s4, 1 }
   0x9   : > { %p152_p3 = scmp.ne.s32.totalorder %s1308_s21, %s1304_s20  ;;  %p153_p4 = scmp.eq.s32.totalorder %s1026_s24, 1 }
   0xa   : > { %s1386_s28 = scalar_select %p134_p1, %s1312_s22, %s136_s26  }
   0xb   : > { %p1388_p5 = por %p147_p2, %p146_p0  ;;  %p1392_p6 = por %p153_p4, %p152_p3 }
   0xc   : > { %p1029_p7 = scmp.ge.s32.totalorder %s1316_s23, 1  ;;  %p192_p8 = scmp.lt.s32.totalorder %s1316_s23, 3 }
   0xe   : > { %p193_p9 = pnand %p1029_p7, %p192_p8 }
   0xf   : > { %v1252_v0 = vld [vmem:[%s1683_s1] sm:$0xff] (!%p193_p9)   ;;  %s1401_s8 = sshll.u32 (!%p193_p9), %s1025_s4, 6  ;;  %v1253_v1 = vld [vmem:[%s1683_s1 + $0x8] sm:$0xff] (!%p193_p9)   ;;  %vm347_vm0 = vcmask (!%p193_p9), 261120   ;;  %s912_s4 = sld [smem:[#allocation2]] (!%p193_p9) }
  0x10   : > { %196 = sbr.rel (%p193_p9) target bundleno = 649 (0x289), region = 40  ;;  %p221_p10 = scmp.lt.s32.totalorder (!%p193_p9), %s1401_s8, 127  ;;  %1144 = vmatprep.subr.bf16.mxu0 (!%p193_p9), %v1252_v0 }
  0x11   : > { %1145 = vmatpush3.bf16.msra.mxu0 (!%p193_p9), %v1252_v0  ;;  %s217_s24 = sand.u32 (!%p193_p9), 1, %s1308_s21   ;;  %s1640_s10 = scalar_lea.hbm (!%p193_p9), %s1687_s5, %s1401_s8 }
  0x12   : > { %1146 = vmatprep.subr.bf16.mxu0 (!%p193_p9), %v1253_v1  ;;  %s1030_s26 = sshll.u32 (!%p193_p9), %s217_s24, 2  ;;  %s1319_s13 = smov (!%p193_p9), [#allocation3]  }
  0x13   : > { %s219_s27 = scalar_lea.vmem (!%p193_p9), [#allocation3], %s1030_s26  ;;  %s1258_s14 = sshll.u32 (!%p193_p9), %s1319_s13, 4  ;;  %s1259_s14 = int_to_ptr.vmem [resolvable:$false] %s1258_s14 }
  0x14   : > { %s967_s6 = sshll.u32 (!%p193_p9), %s219_s27, 4  ;;  %s1642_s6 = int_to_ptr.vmem [resolvable:$true] %s967_s6 }
  0x15   : > { %1147 = vmatpush3.bf16.msra.mxu0 (!%p193_p9), %v1253_v1  ;;  %p1261_p0 = scmp.lt.s32.totalorder (!%p193_p9), %s1642_s6, %s1259_s14 }
  0x17   : > { %s222_s11 = scalar_select %p221_p10, %s1401_s8, 127 }
  0x19   : > { %s1032_s12 = sshll.u32 %s222_s11, 3  ;;  %s953_s11 = scalar_lea.sflag [#allocation4], %s217_s24 }
  0x1a   : > { %s1411_s15 = scalar_lea.vmem %s1682_s0, %s1032_s12  ;;  %s1254_s12 = scalar_lea.vmem %s1642_s6, 64 }
  0x1b   : > { %v228_v2 = vld [vmem:[%s1411_s15] sm:$0xff]  ;;  %v229_v3 = vld [vmem:[%s1411_s15 + $0x8] sm:$0xff]  ;;  %v230_v4 = vld [vmem:[%s1411_s15 + $0x10] sm:$0xff]  ;;  %p1255_p11 = scmp.ne.s32.totalorder %s1642_s6, %s1254_s12 }
  0x1c   : > { %v292_v5 = vpack.c.bf16 %v229_v3, %v228_v2  ;;  %v231_v6 = vld [vmem:[%s1411_s15 + $0x18] sm:$0xff]  ;;  %v232_v7 = vld [vmem:[%s1411_s15 + $0x20] sm:$0xff]  ;;  %v233_v8 = vld [vmem:[%s1411_s15 + $0x28] sm:$0xff] }
  0x1d   : > { %v293_v9 = vpack.c.bf16 %v231_v6, %v230_v4  ;;  %v294_v10 = vpack.c.bf16 %v233_v8, %v232_v7  ;;  %v234_v11 = vld [vmem:[%s1411_s15 + $0x30] sm:$0xff]  ;;  %v235_v12 = vld [vmem:[%s1411_s15 + $0x38] sm:$0xff]  ;;  %v236_v13 = vld [vmem:[%s1411_s15 + $0x40] sm:$0xff]  ;;  %p1256_p12 = pnand %p1255_p11, %p1388_p5 }
  0x1e   : > { %1148 = vmatprep.mubr.msk.bf16.mxu0 %vm347_vm0, %v292_v5  ;;  %v237_v14 = vld [vmem:[%s1411_s15 + $0x48] sm:$0xff]  ;;  %v295_v15 = vpack.c.bf16 %v235_v12, %v234_v11  ;;  %v238_v17 = vld [vmem:[%s1411_s15 + $0x50] sm:$0xff]  ;;  %v239_v18 = vld [vmem:[%s1411_s15 + $0x58] sm:$0xff] }
  0x1f   : > { %1149 = vmatmul.mubr.msk.bf16.vlgmr.msra.gmra.mrb[0].mxu0 %vm347_vm0, %v293_v9  ;;  %v296_v16 = vpack.c.bf16 %v237_v14, %v236_v13  ;;  %v240_v19 = vld [vmem:[%s1411_s15 + $0x60] sm:$0xff]  ;;  %v241_v20 = vld [vmem:[%s1411_s15 + $0x68] sm:$0xff]  ;;  %v297_v21 = vpack.c.bf16 %v239_v18, %v238_v17  ;;  %v242_v23 = vld [vmem:[%s1411_s15 + $0x70] sm:$0xff]  ;;  %p1257_p13 = pneg %p1256_p12 }
  0x20   : > { %1152 = vmatprep.mubr.msk.bf16.mxu0 %vm347_vm0, %v294_v10  ;;  %v298_v22 = vpack.c.bf16 %v241_v20, %v240_v19  ;;  %v243_v24 = vld [vmem:[%s1411_s15 + $0x78] sm:$0xff]  ;;  %v244_v25 = vld [vmem:[%s1411_s15 + $0x80] sm:$0xff]  ;;  %v245_v26 = vld [vmem:[%s1411_s15 + $0x88] sm:$0xff] }
  0x21   : > { %v299_v27 = vpack.c.bf16 %v243_v24, %v242_v23  ;;  %v300_v28 = vpack.c.bf16 %v245_v26, %v244_v25  ;;  %v246_v29 = vld [vmem:[%s1411_s15 + $0x90] sm:$0xff]  ;;  %v247_v30 = vld [vmem:[%s1411_s15 + $0x98] sm:$0xff]  ;;  %v248_v31 = vld [vmem:[%s1411_s15 + $0xa0] sm:$0xff] }
  0x22   : > { %v249_v32 = vld [vmem:[%s1411_s15 + $0xa8] sm:$0xff]  ;;  %v301_v33 = vpack.c.bf16 %v247_v30, %v246_v29  ;;  %v250_v35 = vld [vmem:[%s1411_s15 + $0xb0] sm:$0xff]  ;;  %v251_v36 = vld [vmem:[%s1411_s15 + $0xb8] sm:$0xff] }
  0x23   : > { %v302_v34 = vpack.c.bf16 %v249_v32, %v248_v31  ;;  %v252_v37 = vld [vmem:[%s1411_s15 + $0xc0] sm:$0xff]  ;;  %v253_v38 = vld [vmem:[%s1411_s15 + $0xc8] sm:$0xff]  ;;  %v303_v39 = vpack.c.bf16 %v251_v36, %v250_v35  ;;  %v254_v41 = vld [vmem:[%s1411_s15 + $0xd0] sm:$0xff] }
  0x24   : > { %v304_v40 = vpack.c.bf16 %v253_v38, %v252_v37  ;;  %v255_v42 = vld [vmem:[%s1411_s15 + $0xd8] sm:$0xff]  ;;  %v256_v43 = vld [vmem:[%s1411_s15 + $0xe0] sm:$0xff]  ;;  %v257_v44 = vld [vmem:[%s1411_s15 + $0xe8] sm:$0xff] }
  0x25   : > { %v305_v45 = vpack.c.bf16 %v255_v42, %v254_v41  ;;  %v306_v46 = vpack.c.bf16 %v257_v44, %v256_v43  ;;  %v258_v47 = vld [vmem:[%s1411_s15 + $0xf0] sm:$0xff]  ;;  %v259_v48 = vld [vmem:[%s1411_s15 + $0xf8] sm:$0xff]  ;;  %v260_v49 = vld [vmem:[%s1411_s15 + $0x100] sm:$0xff] }
  0x26   : > { %v261_v50 = vld [vmem:[%s1411_s15 + $0x108] sm:$0xff]  ;;  %v307_v51 = vpack.c.bf16 %v259_v48, %v258_v47  ;;  %v262_v53 = vld [vmem:[%s1411_s15 + $0x110] sm:$0xff]  ;;  %v263_v54 = vld [vmem:[%s1411_s15 + $0x118] sm:$0xff] }
  0x27   : > { %1153 = vmatmul.mubr.msk.bf16.gmra.mrb[4].mxu0 %vm347_vm0, %v295_v15  ;;  %v308_v52 = vpack.c.bf16 %v261_v50, %v260_v49  ;;  %v264_v55 = vld [vmem:[%s1411_s15 + $0x120] sm:$0xff]  ;;  %v265_v56 = vld [vmem:[%s1411_s15 + $0x128] sm:$0xff]  ;;  %v309_v57 = vpack.c.bf16 %v263_v54, %v262_v53  ;;  %v266_v59 = vld [vmem:[%s1411_s15 + $0x130] sm:$0xff] }
  0x28   : > { %1156 = vmatprep.mubr.msk.bf16.mxu0 %vm347_vm0, %v296_v16  ;;  %v310_v58 = vpack.c.bf16 %v265_v56, %v264_v55  ;;  %v267_v60 = vld [vmem:[%s1411_s15 + $0x138] sm:$0xff]  ;;  %v268_v61 = vld [vmem:[%s1411_s15 + $0x140] sm:$0xff]  ;;  %v269_v62 = vld [vmem:[%s1411_s15 + $0x148] sm:$0xff] }
  0x29   : > { %v311_v63 = vpack.c.bf16 %v267_v60, %v266_v59  ;;  %v312_v0 = vpack.c.bf16 %v269_v62, %v268_v61  ;;  %v270_v1 = vld [vmem:[%s1411_s15 + $0x150] sm:$0xff]  ;;  %v271_v2 = vld [vmem:[%s1411_s15 + $0x158] sm:$0xff]  ;;  %v272_v3 = vld [vmem:[%s1411_s15 + $0x160] sm:$0xff] }
  0x2a   : > { %v273_v4 = vld [vmem:[%s1411_s15 + $0x168] sm:$0xff]  ;;  %v313_v5 = vpack.c.bf16 %v271_v2, %v270_v1  ;;  %v274_v7 = vld [vmem:[%s1411_s15 + $0x170] sm:$0xff]  ;;  %v275_v8 = vld [vmem:[%s1411_s15 + $0x178] sm:$0xff] }
  0x2b   : > { %v314_v6 = vpack.c.bf16 %v273_v4, %v272_v3  ;;  %v276_v9 = vld [vmem:[%s1411_s15 + $0x180] sm:$0xff]  ;;  %v277_v10 = vld [vmem:[%s1411_s15 + $0x188] sm:$0xff]  ;;  %v315_v11 = vpack.c.bf16 %v275_v8, %v274_v7  ;;  %v278_v13 = vld [vmem:[%s1411_s15 + $0x190] sm:$0xff] }
  0x2c   : > { %v316_v12 = vpack.c.bf16 %v277_v10, %v276_v9  ;;  %v279_v14 = vld [vmem:[%s1411_s15 + $0x198] sm:$0xff]  ;;  %v280_v15 = vld [vmem:[%s1411_s15 + $0x1a0] sm:$0xff]  ;;  %v281_v16 = vld [vmem:[%s1411_s15 + $0x1a8] sm:$0xff] }
  0x2d   : > { %v317_v17 = vpack.c.bf16 %v279_v14, %v278_v13  ;;  %v318_v18 = vpack.c.bf16 %v281_v16, %v280_v15  ;;  %v282_v19 = vld [vmem:[%s1411_s15 + $0x1b0] sm:$0xff]  ;;  %v283_v20 = vld [vmem:[%s1411_s15 + $0x1b8] sm:$0xff]  ;;  %v1518_v35 = vld [vmem:[%s1684_s2] ss:$0 sm:$0xff] }
  0x2e   : > { %v319_v23 = vpack.c.bf16 %v283_v20, %v282_v19  ;;  %v286_v25 = vld [vmem:[%s1411_s15 + $0x1d0] sm:$0xff]  ;;  %v287_v26 = vld [vmem:[%s1411_s15 + $0x1d8] sm:$0xff] }
  0x2f   : > { %1157 = vmatmul.mubr.msk.bf16.gmra.mrb[8].mxu0 %vm347_vm0, %v297_v21  ;;  %v284_v21 = vld [vmem:[%s1411_s15 + $0x1c0] sm:$0xff]  ;;  %v321_v29 = vpack.c.bf16 %v287_v26, %v286_v25  ;;  %v290_v31 = vld [vmem:[%s1411_s15 + $0x1f0] sm:$0xff]  ;;  %v291_v32 = vld [vmem:[%s1411_s15 + $0x1f8] sm:$0xff] }
  0x30   : > { %1160 = vmatprep.mubr.msk.bf16.mxu0 %vm347_vm0, %v298_v22  ;;  %v285_v22 = vld [vmem:[%s1411_s15 + $0x1c8] sm:$0xff] }
  0x31   : > { %v320_v24 = vpack.c.bf16 %v285_v22, %v284_v21 }
  0x37   : > { %1161 = vmatmul.mubr.msk.bf16.gmra.mrb[12].mxu0 %vm347_vm0, %v299_v27  ;;  %v288_v27 = vld [vmem:[%s1411_s15 + $0x1e0] sm:$0xff] }
  0x38   : > { %1164 = vmatprep.mubr.msk.bf16.mxu0 %vm347_vm0, %v300_v28  ;;  %v289_v28 = vld [vmem:[%s1411_s15 + $0x1e8] sm:$0xff]  ;;  %s1260_s15 = scalar_lea.vmem %s1259_s14, 128 }
  0x39   : > { %v322_v30 = vpack.c.bf16 %v289_v28, %v288_v27  ;;  %p1262_p1 = scmp.lt.s32.totalorder %s1260_s15, %s1254_s12 }
  0x3b   : > { %p1263_p2 = por %p1262_p1, %p1261_p0 }
  0x3d   : > { %p1264_p3 = pnand %p1263_p2, %p1257_p13 }
  0x3f   : > { %1165 = vmatmul.mubr.msk.bf16.gmra.mrb[16].mxu0 %vm347_vm0, %v301_v33  ;;  %v323_v33 = vpack.c.bf16 %v291_v32, %v290_v31 }
  0x40   : > { %1168 = vmatprep.mubr.msk.bf16.mxu0 %vm347_vm0, %v302_v34  ;;  %v1512_v34 = vld [vmem:[%s1685_s3] sm:$0xf] }
  0x41   : > { %1124 = vmatprep.mubr.bf16.mxu1 %v1512_v34 }
  0x47   : > { %1169 = vmatmul.mubr.msk.bf16.gmra.mrb[20].mxu0 %vm347_vm0, %v303_v39 }
  0x48   : > { %1172 = vmatprep.mubr.msk.bf16.mxu0 %vm347_vm0, %v304_v40 }
  0x4f   : > { %1173 = vmatmul.mubr.msk.bf16.gmra.mrb[24].mxu0 %vm347_vm0, %v305_v45 }
  0x50   : > { %1176 = vmatprep.mubr.msk.bf16.mxu0 %vm347_vm0, %v306_v46 }
  0x57   : > { %1177 = vmatmul.mubr.msk.bf16.gmra.mrb[28].mxu0 %vm347_vm0, %v307_v51 }
  0x58   : > { %1180 = vmatprep.mubr.msk.bf16.mxu0 %vm347_vm0, %v308_v52 }
  0x5f   : > { %1181 = vmatmul.mubr.msk.bf16.gmra.mrb[32].mxu0 %vm347_vm0, %v309_v57 }
  0x60   : > { %1184 = vmatprep.mubr.msk.bf16.mxu0 %vm347_vm0, %v310_v58 }
  0x67   : > { %1185 = vmatmul.mubr.msk.bf16.gmra.mrb[36].mxu0 %vm347_vm0, %v311_v63 }
  0x68   : > { %1188 = vmatprep.mubr.msk.bf16.mxu0 %vm347_vm0, %v312_v0 }
  0x6f   : > { %1189 = vmatmul.mubr.msk.bf16.gmra.mrb[40].mxu0 %vm347_vm0, %v313_v5 }
  0x70   : > { %1192 = vmatprep.mubr.msk.bf16.mxu0 %vm347_vm0, %v314_v6 }
  0x77   : > { %1193 = vmatmul.mubr.msk.bf16.gmra.mrb[44].mxu0 %vm347_vm0, %v315_v11 }
  0x78   : > { %1196 = vmatprep.mubr.msk.bf16.mxu0 %vm347_vm0, %v316_v12 }
  0x7f   : > { %1197 = vmatmul.mubr.msk.bf16.gmra.mrb[48].mxu0 %vm347_vm0, %v317_v17 }
  0x80   : > { %1200 = vmatprep.mubr.msk.bf16.mxu0 %vm347_vm0, %v318_v18 }
  0x87   : > { %1201 = vmatmul.mubr.msk.bf16.gmra.mrb[52].mxu0 %vm347_vm0, %v319_v23 }
  0x88   : > { %1204 = vmatprep.mubr.msk.bf16.mxu0 %vm347_vm0, %v320_v24 }
  0x8f   : > { %1205 = vmatmul.mubr.msk.bf16.gmra.mrb[56].mxu0 %vm347_vm0, %v321_v29 }
  0x90   : > { %1208 = vmatprep.mubr.msk.bf16.mxu0 %vm347_vm0, %v322_v30 }
  0x97   : > { %1209 = vmatmul.mubr.msk.bf16.gmra.mrb[60].mxu0 %vm347_vm0, %v323_v33 }
  0xf2   : > { %v1150_v36 = vpop.f32.mrb[0].mxu0 }
  0xf3   : > { %v487_v37 = vadd.f32 %v1150_v36, %v1518_v35  ;;  %v478_v38 = vpop.f32.mrb[1].mxu0 }
  0xf4   : > { %v479_v39 = vadd.f32 %v1518_v35, %v478_v38  ;;  %v1151_v40 = vpop.f32.mrb[2].mxu0 }
  0xf5   : > { %v490_v41 = vadd.f32 %v1151_v40, %v1518_v35  ;;  %v481_v42 = vpop.f32.mrb[3].mxu0  ;;  %v735_v44 = vmax.f32 %v487_v37, 0.0 }
  0xf6   : > { %v482_v43 = vadd.f32 %v1518_v35, %v481_v42  ;;  %v733_v46 = vmax.f32 %v479_v39, 0.0 }
  0xf7   : > { %v736_v45 = vmax.f32 %v490_v41, 0.0 }
  0xf8   : > { %v734_v47 = vmax.f32 %v482_v43, 0.0 }
  0xf9   : > { %v1524_v48 = vpack.c.bf16 %v736_v45, %v735_v44 }
  0xfa   : > { %v1154_v49 = vpop.f32.mrb[4].mxu0  ;;  %v1526_v50 = vpack.c.bf16 %v734_v47, %v733_v46 }
  0xfb   : > { %v503_v51 = vadd.f32 %v1154_v49, %v1518_v35  ;;  %v494_v52 = vpop.f32.mrb[5].mxu0 }
  0xfc   : > { %v495_v53 = vadd.f32 %v1518_v35, %v494_v52  ;;  %v1155_v54 = vpop.f32.mrb[6].mxu0 }
  0xfd   : > { %v506_v55 = vadd.f32 %v1155_v54, %v1518_v35  ;;  %v497_v56 = vpop.f32.mrb[7].mxu0  ;;  %v739_v58 = vmax.f32 %v503_v51, 0.0 }
  0xfe   : > { %v498_v57 = vadd.f32 %v1518_v35, %v497_v56  ;;  %v737_v60 = vmax.f32 %v495_v53, 0.0 }
  0xff   : > { %v740_v59 = vmax.f32 %v506_v55, 0.0 }
 0x100   : > { %v738_v61 = vmax.f32 %v498_v57, 0.0 }
 0x101   : > { %v1532_v62 = vpack.c.bf16 %v740_v59, %v739_v58 }
 0x102   : > { %v1534_v63 = vpack.c.bf16 %v738_v61, %v737_v60  ;;  %v1158_v0 = vpop.f32.mrb[8].mxu0 }
 0x103   : > { %v519_v1 = vadd.f32 %v1158_v0, %v1518_v35  ;;  %v510_v2 = vpop.f32.mrb[9].mxu0 }
 0x104   : > { %v511_v3 = vadd.f32 %v1518_v35, %v510_v2  ;;  %v1159_v4 = vpop.f32.mrb[10].mxu0 }
 0x105   : > { %v522_v5 = vadd.f32 %v1159_v4, %v1518_v35  ;;  %v513_v6 = vpop.f32.mrb[11].mxu0  ;;  %v743_v8 = vmax.f32 %v519_v1, 0.0 }
 0x106   : > { %v514_v7 = vadd.f32 %v1518_v35, %v513_v6  ;;  %v741_v10 = vmax.f32 %v511_v3, 0.0 }
 0x107   : > { %v744_v9 = vmax.f32 %v522_v5, 0.0 }
 0x108   : > { %v742_v11 = vmax.f32 %v514_v7, 0.0 }
 0x109   : > { %v1540_v12 = vpack.c.bf16 %v744_v9, %v743_v8 }
 0x10a   : > { %v1542_v13 = vpack.c.bf16 %v742_v11, %v741_v10  ;;  %v1162_v14 = vpop.f32.mrb[12].mxu0 }
 0x10b   : > { %v535_v15 = vadd.f32 %v1162_v14, %v1518_v35  ;;  %v526_v16 = vpop.f32.mrb[13].mxu0 }
 0x10c   : > { %v527_v17 = vadd.f32 %v1518_v35, %v526_v16  ;;  %v1163_v18 = vpop.f32.mrb[14].mxu0 }
 0x10d   : > { %v538_v19 = vadd.f32 %v1163_v18, %v1518_v35  ;;  %v529_v20 = vpop.f32.mrb[15].mxu0  ;;  %v747_v22 = vmax.f32 %v535_v15, 0.0 }
 0x10e   : > { %v530_v21 = vadd.f32 %v1518_v35, %v529_v20  ;;  %v745_v24 = vmax.f32 %v527_v17, 0.0 }
 0x10f   : > { %v748_v23 = vmax.f32 %v538_v19, 0.0 }
 0x110   : > { %v746_v25 = vmax.f32 %v530_v21, 0.0 }
 0x111   : > { %v1548_v26 = vpack.c.bf16 %v748_v23, %v747_v22 }
 0x112   : > { %v1550_v27 = vpack.c.bf16 %v746_v25, %v745_v24  ;;  %v1166_v28 = vpop.f32.mrb[16].mxu0 }
 0x113   : > { %v551_v29 = vadd.f32 %v1166_v28, %v1518_v35  ;;  %v542_v30 = vpop.f32.mrb[17].mxu0 }
 0x114   : > { %v543_v31 = vadd.f32 %v1518_v35, %v542_v30  ;;  %v1167_v32 = vpop.f32.mrb[18].mxu0 }
 0x115   : > { %v554_v33 = vadd.f32 %v1167_v32, %v1518_v35  ;;  %v545_v36 = vpop.f32.mrb[19].mxu0  ;;  %v751_v38 = vmax.f32 %v551_v29, 0.0 }
 0x116   : > { %v546_v37 = vadd.f32 %v1518_v35, %v545_v36  ;;  %v749_v40 = vmax.f32 %v543_v31, 0.0 }
 0x117   : > { %v752_v39 = vmax.f32 %v554_v33, 0.0 }
 0x118   : > { %v750_v41 = vmax.f32 %v546_v37, 0.0 }
 0x119   : > { %v806_v42 = vpack.c.bf16 %v752_v39, %v751_v38 }
 0x11a   : > { %v1170_v43 = vpop.f32.mrb[20].mxu0  ;;  %v805_v44 = vpack.c.bf16 %v750_v41, %v749_v40 }
 0x11b   : > { %v567_v45 = vadd.f32 %v1170_v43, %v1518_v35  ;;  %v558_v46 = vpop.f32.mrb[21].mxu0 }
 0x11c   : > { %v559_v47 = vadd.f32 %v1518_v35, %v558_v46  ;;  %v1171_v49 = vpop.f32.mrb[22].mxu0  ;;  %1108 = vmatprep.subr.bf16.mxu1 %v805_v44 }
 0x11d   : > { %v570_v51 = vadd.f32 %v1171_v49, %v1518_v35  ;;  %v561_v52 = vpop.f32.mrb[23].mxu0  ;;  %1109 = vmatpush3.bf16.xpose.msra.mxu1 %v1526_v50  ;;  %v755_v54 = vmax.f32 %v567_v45, 0.0 }
 0x11e   : > { %v562_v53 = vadd.f32 %v1518_v35, %v561_v52  ;;  %1110 = vmatprep.subr.bf16.mxu1 %v806_v42  ;;  %v753_v56 = vmax.f32 %v559_v47, 0.0 }
 0x11f   : > { %v756_v55 = vmax.f32 %v570_v51, 0.0 }
 0x120   : > { %v754_v57 = vmax.f32 %v562_v53, 0.0 }
 0x121   : > { %v808_v58 = vpack.c.bf16 %v756_v55, %v755_v54 }
 0x122   : > { %v807_v59 = vpack.c.bf16 %v754_v57, %v753_v56  ;;  %v1174_v60 = vpop.f32.mrb[24].mxu0 }
 0x123   : > { %v583_v61 = vadd.f32 %v1174_v60, %v1518_v35  ;;  %v574_v0 = vpop.f32.mrb[25].mxu0 }
 0x124   : > { %v575_v1 = vadd.f32 %v1518_v35, %v574_v0  ;;  %v1175_v2 = vpop.f32.mrb[26].mxu0 }
 0x125   : > { %v586_v3 = vadd.f32 %v1175_v2, %v1518_v35  ;;  %v577_v4 = vpop.f32.mrb[27].mxu0  ;;  %1111 = vmatpush3.bf16.xpose.msra.mxu1 %v1524_v48  ;;  %v759_v5 = vmax.f32 %v583_v61, 0.0 }
 0x126   : > { %v578_v50 = vadd.f32 %v1518_v35, %v577_v4  ;;  %1112 = vmatprep.subr.bf16.mxu1 %v807_v59  ;;  %v757_v7 = vmax.f32 %v575_v1, 0.0 }
 0x127   : > { %v760_v6 = vmax.f32 %v586_v3, 0.0 }
 0x128   : > { %v758_v8 = vmax.f32 %v578_v50, 0.0 }
 0x129   : > { %v810_v9 = vpack.c.bf16 %v760_v6, %v759_v5 }
 0x12a   : > { %v809_v10 = vpack.c.bf16 %v758_v8, %v757_v7  ;;  %v1178_v11 = vpop.f32.mrb[28].mxu0 }
 0x12b   : > { %v599_v14 = vadd.f32 %v1178_v11, %v1518_v35  ;;  %v590_v15 = vpop.f32.mrb[29].mxu0 }
 0x12c   : > { %v591_v16 = vadd.f32 %v1518_v35, %v590_v15  ;;  %v1179_v17 = vpop.f32.mrb[30].mxu0 }
 0x12d   : > { %v602_v18 = vadd.f32 %v1179_v17, %v1518_v35  ;;  %v593_v19 = vpop.f32.mrb[31].mxu0  ;;  %1113 = vmatpush3.bf16.xpose.msra.mxu1 %v1534_v63  ;;  %v763_v20 = vmax.f32 %v599_v14, 0.0 }
 0x12e   : > { %v594_v48 = vadd.f32 %v1518_v35, %v593_v19  ;;  %1114 = vmatprep.subr.bf16.mxu1 %v808_v58  ;;  %v761_v22 = vmax.f32 %v591_v16, 0.0 }
 0x12f   : > { %v764_v21 = vmax.f32 %v602_v18, 0.0 }
 0x130   : > { %v762_v23 = vmax.f32 %v594_v48, 0.0 }
 0x131   : > { %v812_v24 = vpack.c.bf16 %v764_v21, %v763_v20 }
 0x132   : > { %v811_v25 = vpack.c.bf16 %v762_v23, %v761_v22  ;;  %v1182_v28 = vpop.f32.mrb[32].mxu0 }
 0x133   : > { %v615_v29 = vadd.f32 %v1182_v28, %v1518_v35  ;;  %v606_v30 = vpop.f32.mrb[33].mxu0 }
 0x134   : > { %v607_v31 = vadd.f32 %v1518_v35, %v606_v30  ;;  %v1183_v32 = vpop.f32.mrb[34].mxu0 }
 0x135   : > { %v618_v33 = vadd.f32 %v1183_v32, %v1518_v35  ;;  %v609_v36 = vpop.f32.mrb[35].mxu0  ;;  %1115 = vmatpush3.bf16.xpose.msra.mxu1 %v1532_v62  ;;  %v767_v37 = vmax.f32 %v615_v29, 0.0 }
 0x136   : > { %v610_v63 = vadd.f32 %v1518_v35, %v609_v36  ;;  %1116 = vmatprep.subr.bf16.mxu1 %v809_v10  ;;  %v765_v39 = vmax.f32 %v607_v31, 0.0 }
 0x137   : > { %v768_v38 = vmax.f32 %v618_v33, 0.0 }
 0x138   : > { %v766_v40 = vmax.f32 %v610_v63, 0.0 }
 0x139   : > { %v1576_v41 = vpack.c.bf16 %v768_v38, %v767_v37 }
 0x13a   : > { %v1578_v42 = vpack.c.bf16 %v766_v40, %v765_v39  ;;  %v1186_v43 = vpop.f32.mrb[36].mxu0 }
 0x13b   : > { %v631_v44 = vadd.f32 %v1186_v43, %v1518_v35  ;;  %v622_v45 = vpop.f32.mrb[37].mxu0 }
 0x13c   : > { %v623_v46 = vadd.f32 %v1518_v35, %v622_v45  ;;  %v1187_v47 = vpop.f32.mrb[38].mxu0 }
 0x13d   : > { %v634_v62 = vadd.f32 %v1187_v47, %v1518_v35  ;;  %v625_v49 = vpop.f32.mrb[39].mxu0  ;;  %1117 = vmatpush3.bf16.xpose.msra.mxu1 %v1542_v13  ;;  %v771_v52 = vmax.f32 %v631_v44, 0.0 }
 0x13e   : > { %v626_v51 = vadd.f32 %v1518_v35, %v625_v49  ;;  %1118 = vmatprep.subr.bf16.mxu1 %v810_v9  ;;  %v769_v54 = vmax.f32 %v623_v46, 0.0 }
 0x13f   : > { %v772_v53 = vmax.f32 %v634_v62, 0.0 }
 0x140   : > { %v770_v55 = vmax.f32 %v626_v51, 0.0 }
 0x141   : > { %v1585_v56 = vpack.c.bf16 %v772_v53, %v771_v52 }
 0x142   : > { %v1587_v57 = vpack.c.bf16 %v770_v55, %v769_v54  ;;  %v1190_v58 = vpop.f32.mrb[40].mxu0 }
 0x143   : > { %v647_v59 = vadd.f32 %v1190_v58, %v1518_v35  ;;  %v638_v60 = vpop.f32.mrb[41].mxu0 }
 0x144   : > { %v639_v61 = vadd.f32 %v1518_v35, %v638_v60  ;;  %v1191_v0 = vpop.f32.mrb[42].mxu0 }
 0x145   : > { %v650_v13 = vadd.f32 %v1191_v0, %v1518_v35  ;;  %v641_v1 = vpop.f32.mrb[43].mxu0  ;;  %1119 = vmatpush3.bf16.xpose.msra.mxu1 %v1540_v12  ;;  %v775_v3 = vmax.f32 %v647_v59, 0.0 }
 0x146   : > { %v642_v2 = vadd.f32 %v1518_v35, %v641_v1  ;;  %1120 = vmatprep.subr.bf16.mxu1 %v811_v25  ;;  %v773_v50 = vmax.f32 %v639_v61, 0.0 }
 0x147   : > { %v776_v4 = vmax.f32 %v650_v13, 0.0 }
 0x148   : > { %v774_v5 = vmax.f32 %v642_v2, 0.0 }
 0x149   : > { %v1594_v6 = vpack.c.bf16 %v776_v4, %v775_v3 }
 0x14a   : > { %v1596_v7 = vpack.c.bf16 %v774_v5, %v773_v50  ;;  %v1194_v8 = vpop.f32.mrb[44].mxu0 }
 0x14b   : > { %v663_v9 = vadd.f32 %v1194_v8, %v1518_v35  ;;  %v654_v10 = vpop.f32.mrb[45].mxu0 }
 0x14c   : > { %v655_v11 = vadd.f32 %v1518_v35, %v654_v10  ;;  %v1195_v14 = vpop.f32.mrb[46].mxu0 }
 0x14d   : > { %v666_v12 = vadd.f32 %v1195_v14, %v1518_v35  ;;  %v657_v15 = vpop.f32.mrb[47].mxu0  ;;  %1121 = vmatpush3.bf16.xpose.msra.mxu1 %v1550_v27  ;;  %v779_v17 = vmax.f32 %v663_v9, 0.0 }
 0x14e   : > { %v658_v16 = vadd.f32 %v1518_v35, %v657_v15  ;;  %1122 = vmatprep.subr.bf16.mxu1 %v812_v24  ;;  %v777_v19 = vmax.f32 %v655_v11, 0.0 }
 0x14f   : > { %v780_v18 = vmax.f32 %v666_v12, 0.0 }
 0x150   : > { %v778_v48 = vmax.f32 %v658_v16, 0.0 }
 0x151   : > { %v1603_v20 = vpack.c.bf16 %v780_v18, %v779_v17 }
 0x152   : > { %v1605_v21 = vpack.c.bf16 %v778_v48, %v777_v19  ;;  %v1198_v22 = vpop.f32.mrb[48].mxu0 }
 0x153   : > { %v679_v23 = vadd.f32 %v1198_v22, %v1518_v35  ;;  %v670_v25 = vpop.f32.mrb[49].mxu0 }
 0x154   : > { %v671_v28 = vadd.f32 %v1518_v35, %v670_v25  ;;  %v1199_v29 = vpop.f32.mrb[50].mxu0 }
 0x155   : > { %v682_v27 = vadd.f32 %v1199_v29, %v1518_v35  ;;  %v673_v30 = vpop.f32.mrb[51].mxu0  ;;  %1123 = vmatpush3.bf16.xpose.msra.mxu1 %v1548_v26  ;;  %v783_v31 = vmax.f32 %v679_v23, 0.0  ;;  %v1318_v29 = vmov 1966171168  }
 0x156   : > { %v674_v24 = vadd.f32 %v1518_v35, %v673_v30  ;;  %v781_v33 = vmax.f32 %v671_v28, 0.0 }
 0x157   : > { %v784_v32 = vmax.f32 %v682_v27, 0.0  ;;  %v927_v27 = vlaneseq }
 0x158   : > { %v782_v36 = vmax.f32 %v674_v24, 0.0 }
 0x159   : > { %v822_v63 = vpack.c.bf16 %v784_v32, %v783_v31  ;;  %vm949_vm1 = vcmp.lt.s32.totalorder %v927_v27, 512 }
 0x15a   : > { %v821_v37 = vpack.c.bf16 %v782_v36, %v781_v33  ;;  %v1202_v38 = vpop.f32.mrb[52].mxu0 }
 0x15b   : > { %v695_v39 = vadd.f32 %v1202_v38, %v1518_v35  ;;  %v686_v40 = vpop.f32.mrb[53].mxu0 }
 0x15c   : > { %1125 = vmatmul.mubr.bf16.vlgmr.msra.gmra.mrb[0].mxu1 %v1512_v34  ;;  %1126 = vmatprep.subr.bf16.mxu1 %v821_v37  ;;  %v687_v43 = vadd.f32 %v1518_v35, %v686_v40  ;;  %v1203_v44 = vpop.f32.mrb[54].mxu0 }
 0x15d   : > { %1127 = vmatpush3.bf16.xpose.msra.mxu1 %v1578_v42  ;;  %v787_v26 = vmax.f32 %v695_v39, 0.0  ;;  %v698_v45 = vadd.f32 %v1203_v44, %v1518_v35  ;;  %v689_v46 = vpop.f32.mrb[55].mxu0  ;;  %1142 = vmatprep.mubr.bf16.mxu1 %v1512_v34 }
 0x15e   : > { %1128 = vmatprep.subr.bf16.mxu1 %v822_v63  ;;  %v785_v47 = vmax.f32 %v687_v43, 0.0  ;;  %v690_v62 = vadd.f32 %v1518_v35, %v689_v46 }
 0x15f   : > { %v788_v49 = vmax.f32 %v698_v45, 0.0 }
 0x160   : > { %v786_v51 = vmax.f32 %v690_v62, 0.0 }
 0x161   : > { %v824_v52 = vpack.c.bf16 %v788_v49, %v787_v26 }
 0x162   : > { %v823_v53 = vpack.c.bf16 %v786_v51, %v785_v47  ;;  %v1206_v54 = vpop.f32.mrb[56].mxu0 }
 0x163   : > { %v711_v55 = vadd.f32 %v1206_v54, %v1518_v35  ;;  %v702_v58 = vpop.f32.mrb[57].mxu0 }
 0x164   : > { %v703_v42 = vadd.f32 %v1518_v35, %v702_v58  ;;  %v1207_v59 = vpop.f32.mrb[58].mxu0 }
 0x165   : > { %1129 = vmatpush3.bf16.xpose.msra.mxu1 %v1576_v41  ;;  %v791_v60 = vmax.f32 %v711_v55, 0.0  ;;  %v714_v61 = vadd.f32 %v1207_v59, %v1518_v35  ;;  %v705_v0 = vpop.f32.mrb[59].mxu0 }
 0x166   : > { %1130 = vmatprep.subr.bf16.mxu1 %v823_v53  ;;  %v789_v13 = vmax.f32 %v703_v42, 0.0  ;;  %v706_v1 = vadd.f32 %v1518_v35, %v705_v0 }
 0x167   : > { %v792_v2 = vmax.f32 %v714_v61, 0.0 }
 0x168   : > { %v790_v3 = vmax.f32 %v706_v1, 0.0 }
 0x169   : > { %v826_v4 = vpack.c.bf16 %v792_v2, %v791_v60 }
 0x16a   : > { %v825_v50 = vpack.c.bf16 %v790_v3, %v789_v13  ;;  %v1210_v5 = vpop.f32.mrb[60].mxu0 }
 0x16b   : > { %v727_v8 = vadd.f32 %v1210_v5, %v1518_v35  ;;  %v718_v9 = vpop.f32.mrb[61].mxu0 }
 0x16c   : > { %v719_v10 = vadd.f32 %v1518_v35, %v718_v9  ;;  %v1211_v11 = vpop.f32.mrb[62].mxu0 }
 0x16d   : > { %1131 = vmatpush3.bf16.xpose.msra.mxu1 %v1587_v57  ;;  %v795_v41 = vmax.f32 %v727_v8, 0.0  ;;  %v730_v14 = vadd.f32 %v1211_v11, %v1518_v35  ;;  %v721_v12 = vpop.f32.mrb[63].mxu0 }
 0x16e   : > { %1132 = vmatprep.subr.bf16.mxu1 %v824_v52  ;;  %v793_v15 = vmax.f32 %v719_v10, 0.0  ;;  %v722_v16 = vadd.f32 %v1518_v35, %v721_v12  ;;  %v913_v35 = vstv %s912_s4 }
 0x16f   : > { %v796_v17 = vmax.f32 %v730_v14, 0.0 }
 0x170   : > { %v794_v18 = vmax.f32 %v722_v16, 0.0 }
 0x171   : > { %v828_v19 = vpack.c.bf16 %v796_v17, %v795_v41 }
 0x172   : > { %v827_v48 = vpack.c.bf16 %v794_v18, %v793_v15 }
 0x175   : > { %1133 = vmatpush3.bf16.xpose.msra.mxu1 %v1585_v56 }
 0x176   : > { %1134 = vmatprep.subr.bf16.mxu1 %v825_v50 }
 0x17d   : > { %1135 = vmatpush3.bf16.xpose.msra.mxu1 %v1596_v7 }
 0x17e   : > { %1136 = vmatprep.subr.bf16.mxu1 %v826_v4 }
 0x185   : > { %1137 = vmatpush3.bf16.xpose.msra.mxu1 %v1594_v6  ;;  %v925_v6 = vunpack.c.l.s4 %v1318_v29 }
 0x186   : > { %1138 = vmatprep.subr.bf16.mxu1 %v827_v48 }
 0x187   : > { %v926_v30 = vunpack.c.0.s8 %v925_v6 }
 0x18d   : > { %1139 = vmatpush3.bf16.xpose.msra.mxu1 %v1605_v21  ;;  %v928_v21 = vshrl.u32 %v927_v27, 7 }
 0x18e   : > { %1140 = vmatprep.subr.bf16.mxu1 %v828_v19 }
 0x195   : > { %1141 = vmatpush3.bf16.xpose.msra.mxu1 %v1603_v20 }
 0x19c   : > { %1143 = vmatmul.mubr.bf16.vlgmr.msra.gmra.mrb[4].mxu1 %v1512_v34  ;;  %v929_v34 = vsub.s32 %v926_v30, %v928_v21 }
 0x22f   : > { %v864_v57 = vpop.f32.mrb[0].mxu1 }
 0x230   : > { %v914_v22 = vadd.f32 %v913_v35, %v864_v57  ;;  %v866_v56 = vpop.f32.mrb[1].mxu1 }
 0x231   : > { %v915_v23 = vadd.f32 %v913_v35, %v866_v56  ;;  %v868_v25 = vpop.f32.mrb[2].mxu1 }
 0x232   : > { %v869_v7 = vpop.f32.mrb[3].mxu1 }
 0x233   : > { %v922_v28 = vcombine.low %v914_v22, %v915_v23 }
 0x235   : > { %v930_v37 = vrot.slane %v922_v28, %v929_v34 }
 0x26f   : > { %v905_v24 = vpop.f32.mrb[4].mxu1 }
 0x270   : > { %v916_v20 = vadd.f32 %v913_v35, %v905_v24  ;;  %v907_v31 = vpop.f32.mrb[5].mxu1 }
 0x271   : > { %v917_v32 = vadd.f32 %v913_v35, %v907_v31  ;;  %v909_v33 = vpop.f32.mrb[6].mxu1 }
 0x272   : > { %v910_v36 = vpop.f32.mrb[7].mxu1 }
 0x273   : > { %v923_v63 = vcombine.low %v916_v20, %v917_v32 }
 0x275   : > { %v937_v38 = vrot.slane %v923_v63, %v929_v34 }
 0x277   : > { %v938_v39 = vcombine.low %v930_v37, %v937_v38 }
 0x279   : > { %v945_v40 = vrot.slane %v938_v39, %v929_v34 }
 0x27b   : > { %951 = vst.msk [vmem:[%s219_s27] sm:$0xf] %vm949_vm1, %v945_v40 }
 0x27c   : > { %1267 = shalt.err (!%p1264_p3)
}
 0x27d   : > { %s1268_s8 = scalar_lea.hbm %s1640_s10, 64  ;;  %s1272_s18 = scalar_lea.hbm %s1687_s5, 128 }
 0x27e   : > { %p1269_p4 = scmp.ne.s32.totalorder %s1640_s10, %s1268_s8  ;;  %p1273_p9 = scmp.lt.u32.totalorder %s1640_s10, %s1687_s5 }
 0x27f   : > { %p1274_p10 = scmp.lt.u32.totalorder %s1272_s18, %s1268_s8  ;;  %p1276_p12 = scmp.lt.u32.totalorder %s1268_s8, %s1640_s10 }
 0x280   : > { %p1270_p7 = pnand %p1269_p4, %p1388_p5 }
 0x281   : > { %p1275_p11 = por %p1274_p10, %p1273_p9 }
 0x282   : > { %p1271_p8 = pneg %p1270_p7 }
 0x283   : > { %p1277_p13 = por %p1276_p12, %p1275_p11 }
 0x285   : > { %p1278_p0 = pnand %p1277_p13, %p1271_p8 }
 0x287   : > { %1281 = shalt.err (!%p1278_p0)
}
 0x288   : > { %1212 = dma.vmem_to_hbm [thread:$0]  (%p1388_p5), %s1642_s6, 64, %s1640_s10, %s953_s11  }
 0x289 PF: > { %p1218_p1 = scmp.ge.s32.totalorder %s1316_s23, 2  ;;  %s979_s24 = sand.u32 1, %s1304_s20  }
 0x28a   : > { %s980_s26 = scalar_lea.sflag [#allocation4], %s979_s24 }
 0x28b   : > { %p1215_p2 = pnand %p1218_p1, %p1392_p6 }
 0x28d   : > { %1299 = dma.done.wait (!%p1215_p2), %s980_s26, 64  }
 0x28e   : > { %1301 = vsyncadd (!%p1215_p2), %s980_s26, 4294967232  ;;  %p16_p3 = scmp.ge.s32.totalorder %s1376_s25, 4   ;;  %s1690_s20 = smov %s1308_s21 }
 0x28f   : > { %s1691_s21 = smov %s1312_s22  ;;  %s1692_s22 = smov %s1386_s28 }
 0x290   : > { %s1693_s23 = smov %s1376_s25  ;;  %18 = sbr.rel (!%p16_p3) target bundleno = 5 (0x5), region = 75 }
 0x297   :  { %985 = vsyncpa [#allocation4], 1 }
 0x298   :  { %987 = vsyncpa [#allocation4 + $0x1], 1 }

</bundles_post_ra>
